<compile_context>
chip_gen: v6e
topology: v6e:2x2x1
jax: 0.10.0
libtpu: 0.0.40
codegen_flags: <defaults>
</compile_context>

<pallas_src>
import functools

import jax
import jax.numpy as jnp
from jax import lax
from jax.experimental import pallas as pl
from jax.experimental.pallas import tpu as pltpu

LANE = 128   # TPU lane width: per-gate padded width
SUB = 8      # TPU sublane count: timesteps per grid chunk


def _round_up(x, m):
    return ((x + m - 1) // m) * m


# ----------------------------------------------------------------------------
# Kernel 1: hoisted input projection  Gi = X @ Wi_fused + bi_fused
# One tall, lane-dense matmul over all timesteps (non-recurrent half).
# ----------------------------------------------------------------------------
def _input_proj_kernel(x_ref, wi_ref, bi_ref, gi_ref):
    gi_ref[...] = (
        jnp.dot(x_ref[...], wi_ref[...], preferred_element_type=jnp.float32)
        + bi_ref[...]
    ).astype(gi_ref.dtype)


# ----------------------------------------------------------------------------
# Kernel 2: the sequential GRU recurrence.
# grid = (S_pad // SUB,) chunks of SUB timesteps; inside each chunk an
# unrolled fori_loop carries h (f32) as a loop value; h persists across
# chunks in a VMEM scratch. Only the hidden-path matmul remains per step.
# ----------------------------------------------------------------------------
def _gru_recurrence_kernel(gi_ref,    # (SUB, G)  precomputed input-path gates
                           h0_ref,    # (1, HP)   initial hidden (lane-padded)
                           wh_ref,    # (HP, G)   fused hidden->hidden weights
                           bhn_ref,   # (1, G)    [0 | 0 | b_hn]
                           out_ref,   # (SUB, HP) per-step outputs (chunk block)
                           h_scr,     # (1, HP)   recurrent hidden scratch (f32)
                           *, seq_len, padded_len, hp):
    c = pl.program_id(0)
    ts = out_ref.shape[0]

    @pl.when(c == 0)
    def _():
        h_scr[...] = h0_ref[...].astype(jnp.float32)

    wh = wh_ref[...]                           # loop-invariant
    bhn = bhn_ref[...].astype(jnp.float32)

    def step(i, h):
        gi = gi_ref[pl.ds(i, 1), :]            # (1, G), f32
        gh = jnp.dot(h.astype(wh.dtype), wh,
                     preferred_element_type=jnp.float32) + bhn
        # Gate slices fall on whole-vreg (128-lane) boundaries.
        r = jax.nn.sigmoid(gi[:, 0:hp] + gh[:, 0:hp])
        z = jax.nn.sigmoid(gi[:, hp:2 * hp] + gh[:, hp:2 * hp])
        n = jnp.tanh(gi[:, 2 * hp:3 * hp] + r * gh[:, 2 * hp:3 * hp])
        h_new = (1.0 - z) * n + z * h
        if padded_len != seq_len:
            # Padded timesteps must not disturb the recurrence.
            h_new = jnp.where(c * ts + i < seq_len, h_new, h)
        out_ref[pl.ds(i, 1), :] = h_new.astype(out_ref.dtype)
        return h_new

    # In-kernel unrolled time loop carrying h as a value.
    h_scr[...] = lax.fori_loop(0, ts, step, h_scr[...], unroll=True)


# ----------------------------------------------------------------------------
# Wrappers
# ----------------------------------------------------------------------------
def encoder_rnn_sequence(tokens, hidden, params, matmul_dtype=jnp.float32):
    """Run the EncoderRNN step over a whole token sequence.

    tokens: (S,) int32 token ids
    hidden: (1, 1, H) initial hidden state
    returns: (outputs (S, 1, H), final hidden (1, 1, H))
    matmul_dtype: jnp.bfloat16 recommended on v6e/v7x (gate math stays f32).
    """
    emb = params["embedding"]            # (V, H)
    wi = params["w_ih_fused"]            # (H, G)
    wh = params["w_hh_fused"]            # (HP, G)
    bi = params["b_i_fused"]             # (1, G)
    bhn = params["b_hn_fused"]           # (1, G)

    V, H = emb.shape
    HP, G = wh.shape
    S = int(tokens.shape[0])
    TS = SUB
    S_pad = _round_up(max(S, 1), TS)
    n_chunks = S_pad // TS

    tokens = tokens.astype(jnp.int32)
    tok_pad = jnp.zeros((S_pad,), jnp.int32).at[:S].set(tokens)

    # ---- non-recurrent input path, hoisted out of the sequence loop --------
    # Embedding gather in plain XLA, projection = one (S_pad, H) x (H, G)
    # lane-dense matmul (whole thing runs ahead of / overlapped with the
    # sequential kernel; on v7x it can land on the other TensorCore).
    x_rows = jnp.take(emb, tok_pad, axis=0).astype(matmul_dtype)   # (S_pad, H)
    gi = pl.pallas_call(
        _input_proj_kernel,
        out_shape=jax.ShapeDtypeStruct((S_pad, G), jnp.float32),
    )(x_rows, wi.astype(matmul_dtype), bi)

    # ---- sequential recurrence ---------------------------------------------
    h0 = jnp.zeros((1, HP), jnp.float32).at[:, :H].set(
        hidden.reshape(1, H).astype(jnp.float32))

    kernel = functools.partial(
        _gru_recurrence_kernel, seq_len=S, padded_len=S_pad, hp=HP)

    grid_spec = pltpu.PrefetchScalarGridSpec(
        num_scalar_prefetch=0,
        grid=(n_chunks,),
        in_specs=[
            # precomputed input gates: streamed per 8-step chunk (double-buffered)
            pl.BlockSpec((TS, G), lambda c: (c, 0)),
            # initial hidden (read only at c == 0)
            pl.BlockSpec((1, HP), lambda c: (0, 0)),
            # loop-invariant fused hidden->hidden weights
            # (at production sizes on v7x, consider pipeline_mode=pl.Buffered(1))
            pl.BlockSpec((HP, G), lambda c: (0, 0)),
            pl.BlockSpec((1, G), lambda c: (0, 0)),
        ],
        # dense (8, 128) output tile per chunk -> writeback overlaps next chunk
        out_specs=pl.BlockSpec((TS, HP), lambda c: (c, 0)),
        scratch_shapes=[pltpu.VMEM((1, HP), jnp.float32)],
    )

    outs = pl.pallas_call(
        kernel,
        out_shape=jax.ShapeDtypeStruct((S_pad, HP), jnp.float32),
        grid_spec=grid_spec,
        compiler_params=pltpu.CompilerParams(
            dimension_semantics=("arbitrary",),      # recurrence is sequential
            vmem_limit_bytes=32 * 1024 * 1024),
    )(gi, h0, wh.astype(matmul_dtype), bhn)

    outputs = outs[:S, :H].reshape(S, 1, H)
    new_hidden = outs[S - 1, :H].reshape(1, 1, H)   # output == hidden (1 layer)
    return outputs, new_hidden


def encoder_rnn_forward(token_id, hidden, params, matmul_dtype=jnp.float32):
    """Exact EncoderRNN.forward semantics: one token -> ((1,1,H), (1,1,H))."""
    outputs, new_hidden = encoder_rnn_sequence(
        jnp.reshape(token_id, (1,)).astype(jnp.int32), hidden, params,
        matmul_dtype)
    return outputs.reshape(1, 1, -1), new_hidden


# ----------------------------------------------------------------------------
# Parameter construction (PyTorch-shaped synthetic params, gate order r,z,n)
# ----------------------------------------------------------------------------
def init_params(key, input_size, hidden_size):
    H = hidden_size
    HP = _round_up(H, LANE)      # lane-padded hidden width (per gate)
    G = 3 * HP                   # fused gate width [r | z | n], each 128-aligned
    k_emb, k_wi, k_wh, k_bi, k_bh = jax.random.split(key, 5)
    scale = 1.0 / jnp.sqrt(H)

    embedding = jax.random.normal(k_emb, (input_size, H), jnp.float32)
    w_ih = jax.random.uniform(k_wi, (3, H, H), jnp.float32, -scale, scale)
    w_hh = jax.random.uniform(k_wh, (3, H, H), jnp.float32, -scale, scale)
    b_ih = jax.random.uniform(k_bi, (3, H), jnp.float32, -scale, scale)
    b_hh = jax.random.uniform(k_bh, (3, H), jnp.float32, -scale, scale)

    # Fused, lane-aligned weight slabs: each gate occupies its own 128-lane
    # segment; padded rows/cols are zero so padded lanes stay exactly zero.
    w_ih_fused = jnp.zeros((H, G), jnp.float32)
    w_hh_fused = jnp.zeros((HP, G), jnp.float32)
    for g in range(3):
        w_ih_fused = w_ih_fused.at[:, g * HP:g * HP + H].set(w_ih[g].T)
        w_hh_fused = w_hh_fused.at[:H, g * HP:g * HP + H].set(w_hh[g].T)

    # Pre-summed biases: (b_ir+b_hr), (b_iz+b_hz) fold into the input path;
    # b_hn stays on the hidden path (inside r * (W_hn h + b_hn)).
    b_i_fused = jnp.zeros((1, G), jnp.float32)
    b_i_fused = b_i_fused.at[0, 0 * HP:0 * HP + H].set(b_ih[0] + b_hh[0])
    b_i_fused = b_i_fused.at[0, 1 * HP:1 * HP + H].set(b_ih[1] + b_hh[1])
    b_i_fused = b_i_fused.at[0, 2 * HP:2 * HP + H].set(b_ih[2])
    b_hn_fused = jnp.zeros((1, G), jnp.float32).at[0, 2 * HP:2 * HP + H].set(b_hh[2])

    return {
        "embedding": embedding,
        "w_ih_fused": w_ih_fused,
        "w_hh_fused": w_hh_fused,
        "b_i_fused": b_i_fused,
        "b_hn_fused": b_hn_fused,
        # raw copies for the pure-JAX reference check
        "_w_ih": w_ih, "_w_hh": w_hh, "_b_ih": b_ih, "_b_hh": b_hh,
    }


# ----------------------------------------------------------------------------
# Pure-JAX reference (torch.nn.GRU semantics)
# ----------------------------------------------------------------------------
def _gru_step_ref(x, h, params):
    w_ih, w_hh = params["_w_ih"], params["_w_hh"]
    b_ih, b_hh = params["_b_ih"], params["_b_hh"]
    gi = [x @ w_ih[g].T + b_ih[g] for g in range(3)]
    gh = [h @ w_hh[g].T + b_hh[g] for g in range(3)]
    r = jax.nn.sigmoid(gi[0] + gh[0])
    z = jax.nn.sigmoid(gi[1] + gh[1])
    n = jnp.tanh(gi[2] + r * gh[2])
    return (1.0 - z) * n + z * h


def _reference_sequence(tokens, hidden, params):
    H = params["embedding"].shape[1]
    h = hidden.reshape(1, H)
    outs = []
    for t in range(tokens.shape[0]):
        x = params["embedding"][tokens[t]].reshape(1, H)
        h = _gru_step_ref(x, h, params)
        outs.append(h)
    return jnp.stack(outs).reshape(-1, 1, H), h.reshape(1, 1, H)


if __name__ == "__main__":
    vocab_size = 16
    hidden_size = 32
    seq_len = 8

    key = jax.random.PRNGKey(0)
    params = init_params(key, vocab_size, hidden_size)

    tokens = jax.random.randint(jax.random.PRNGKey(1), (seq_len,), 0,
                                vocab_size, dtype=jnp.int32)
    hidden0 = jnp.zeros((1, 1, hidden_size), dtype=jnp.float32)  # init_hidden()

    ref_outs, ref_h = _reference_sequence(tokens, hidden0, params)

    # f32 matmul path: exact parity with the f32 reference (all generations).
    outs, h_final = encoder_rnn_sequence(tokens, hidden0, params)
    outs, h_final = jax.block_until_ready((outs, h_final))
    assert outs.shape == (seq_len, 1, hidden_size)
    assert h_final.shape == (1, 1, hidden_size)
    assert jnp.allclose(outs, ref_outs, atol=1e-5), "sequence output mismatch"
    assert jnp.allclose(h_final, ref_h, atol=1e-5), "final hidden mismatch"

    # bf16 matmul-operand path (recommended on v6e/v7x); gate math stays f32,
    # so only a relaxed tolerance vs. the f32 reference is needed.
    outs_bf, h_bf = encoder_rnn_sequence(tokens, hidden0, params,
                                         matmul_dtype=jnp.bfloat16)
    outs_bf, h_bf = jax.block_until_ready((outs_bf, h_bf))
    assert jnp.allclose(outs_bf, ref_outs, atol=5e-2), "bf16 output mismatch"
    assert jnp.allclose(h_bf, ref_h, atol=5e-2), "bf16 hidden mismatch"

    # Single-token call: exact EncoderRNN.forward semantics.
    token_id = jnp.array([3], dtype=jnp.int32)
    out1, h1 = encoder_rnn_forward(token_id, hidden0, params)
    out1, h1 = jax.block_until_ready((out1, h1))
    ref_out1, ref_h1 = _reference_sequence(token_id, hidden0, params)
    assert out1.shape == (1, 1, hidden_size) and h1.shape == (1, 1, hidden_size)
    assert jnp.allclose(out1, ref_out1, atol=1e-5), "single-step output mismatch"
    assert jnp.allclose(h1, ref_h1, atol=1e-5), "single-step hidden mismatch"

    print("KERNEL_OK")
</pallas_src>

<mosaic_0001>
module attributes {stable_mosaic.version = 11 : i64} {
  func.func @_input_proj_kernel(%arg0: memref<8x32xf32, #tpu.memory_space<vmem>>, %arg1: memref<32x384xf32, #tpu.memory_space<vmem>>, %arg2: memref<1x384xf32, #tpu.memory_space<vmem>>, %arg3: memref<8x384xf32, #tpu.memory_space<vmem>>) attributes {dimension_semantics = [], scalar_prefetch = 0 : i64, scratch_operands = 0 : i64, tpu.core_type = #tpu.core_type<tc>} {
    %c0 = arith.constant 0 : index
    %c0_0 = arith.constant 0 : index
    %0 = vector.load %arg0[%c0, %c0_0] : memref<8x32xf32, #tpu.memory_space<vmem>>, vector<8x32xf32>
    %c0_1 = arith.constant 0 : index
    %c0_2 = arith.constant 0 : index
    %1 = vector.load %arg1[%c0_1, %c0_2] : memref<32x384xf32, #tpu.memory_space<vmem>>, vector<32x384xf32>
    %cst = arith.constant dense<0.000000e+00> : vector<8x384xf32>
    %2 = tpu.matmul %0, %1, %cst {dimension_numbers = #tpu.dot_dimension_numbers<[1], [0], [0], [1], [0, 0, 1, 1], [], []>} : vector<8x32xf32>, vector<32x384xf32>, vector<8x384xf32> -> vector<8x384xf32>
    %c0_3 = arith.constant 0 : index
    %c0_4 = arith.constant 0 : index
    %3 = vector.load %arg2[%c0_3, %c0_4] : memref<1x384xf32, #tpu.memory_space<vmem>>, vector<1x384xf32>
    %4 = vector.broadcast %3 : vector<1x384xf32> to vector<8x384xf32>
    %5 = arith.addf %2, %4 : vector<8x384xf32>
    %c0_5 = arith.constant 0 : index
    %c0_6 = arith.constant 0 : index
    %6 = vector.load %arg3[%c0_5, %c0_6] : memref<8x384xf32, #tpu.memory_space<vmem>>, vector<8x384xf32>
    tpu.vector_store %arg3[%c0_5, %c0_6], %5 {strides = array<i32>} : memref<8x384xf32, #tpu.memory_space<vmem>>, vector<8x384xf32>,
    return
  }
}

</mosaic_0001>

<bundles_post_ra>
// kernel: tpu_custom_call.1
= control target key start
LH: loop header
LB: loop body
LE: loop exit
PB: predicated region body
PF: predicated region fallthrough
CT: control target
= control target key end

     0   :  { %8 = vsyncpa [#allocation3], 0  ;;  %s365_s0 = inlined_call_operand.hbm [shape: f32[8,32], index: 0, kind: input, shape index: {}]   ;;  %s366_s1 = inlined_call_operand.hbm [shape: f32[32,384], index: 1, kind: input, shape index: {}]   ;;  %s367_s2 = inlined_call_operand.vmem [shape: f32[1,384], index: 2, kind: input, shape index: {}]   ;;  %s368_s3 = inlined_call_operand.hbm [shape: f32[8,384], index: 3, kind: output, shape index: {}]  }
   0x1   :  { %9 = vsyncpa [#allocation6], 0 }
   0x2   :  { %10 = vsyncpa [#allocation4], 0  ;;  %s326_s12 = smov [#allocation2]   ;;  %s327_s14 = smov [#allocation5]  }
   0x3   :  { %s17_s13 = sshll.u32 %s326_s12, 4  ;;  %s26_s15 = sshll.u32 %s327_s14, 4  ;;  %s18_s13 = int_to_ptr.vmem [resolvable:$true] %s17_s13  ;;  %s27_s15 = int_to_ptr.vmem [resolvable:$true] %s26_s15 }
   0x4   :  { %s268_s16 = scalar_lea.vmem %s18_s13, 128  ;;  %p273_p1 = scmp.lt.s32.totalorder %s18_s13, %s18_s13 }
   0x5   :  { %p269_p0 = scmp.ne.s32.totalorder %s18_s13, %s268_s16  ;;  %p274_p2 = scmp.lt.s32.totalorder %s268_s16, %s268_s16 }
   0x7   :  { %p275_p3 = por %p274_p2, %p273_p1 }
   0x9   :  { %p276_p4 = pnand %p275_p3, %p269_p0 }
   0xb   :  { %279 = shalt.err (!%p276_p4)
}
   0xc   :  { %20 = dma.hbm_to_vmem [thread:$0]  %s365_s0, 128, %s18_s13, [#allocation3]  }
   0xd   :  { %s288_s19 = scalar_lea.vmem %s27_s15, 1536  ;;  %p293_p6 = scmp.lt.s32.totalorder %s27_s15, %s27_s15 }
   0xe   :  { %p289_p5 = scmp.ne.s32.totalorder %s27_s15, %s288_s19  ;;  %p294_p7 = scmp.lt.s32.totalorder %s288_s19, %s288_s19 }
  0x10   :  { %p295_p8 = por %p294_p7, %p293_p6 }
  0x12   :  { %p296_p9 = pnand %p295_p8, %p289_p5 }
  0x14   :  { %299 = shalt.err (!%p296_p9)
}
  0x15   :  { %s328_s20 = smov 384   ;;  %s329_s21 = smov 24  }
  0x16   :  { %32 = dma.hbm_to_vmem [thread:$0]  %s366_s1, 1536, %s27_s15, [#allocation6], %s328_s20, %s328_s20, %s329_s21  }
  0x17   :  { %320 = dma.done.wait [#allocation3], 128  }
  0x18   :  { %321 = vsyncadd [#allocation3], 4294967168 }
  0x19   :  { %322 = dma.done.wait [#allocation6], 1536  }
  0x1a   :  { %323 = vsyncadd [#allocation6], 4294965760  ;;  %v330_v0 = vmov 0.0   ;;  %vm331_vm0 = vmmov 0   ;;  %v52_v1 = vld [vmem:[#allocation5 + $0x50] sm:$0xff]  ;;  %v51_v2 = vld [vmem:[#allocation5 + $0x48] sm:$0xff]  ;;  %v56_v14 = vlaneseq }
  0x1b   :  { %242 = vmatprep.subr.mxu1 %v330_v0  ;;  %139 = vmatprep.mubr.f32.mxu0 %v330_v0  ;;  %v53_v3 = vld [vmem:[#allocation5 + $0x58] sm:$0xff]  ;;  %v48_v5 = vld [vmem:[#allocation5 + $0x30] sm:$0xff]  ;;  %v50_v6 = vld [vmem:[#allocation5 + $0x40] sm:$0xff]  ;;  %vm71_vm1 = vcmask 261120   ;;  %s332_s24 = smov [#allocation7]  }
  0x1c   :  { %250 = vmatprep.mubr.msk.f32.mxu1 %vm331_vm0, %v330_v0  ;;  %99 = vmatprep.subr.mxu0 %v52_v1  ;;  %v49_v4 = vld [vmem:[#allocation5 + $0x38] sm:$0xff]  ;;  %v46_v7 = vld [vmem:[#allocation5 + $0x20] sm:$0xff]  ;;  %v47_v8 = vld [vmem:[#allocation5 + $0x28] sm:$0xff]  ;;  %v57_v15 = vshrl.u32 %v56_v14, 7  ;;  %s225_s25 = sshll.u32 %s332_s24, 4  ;;  %s226_s25 = int_to_ptr.vmem [resolvable:$true] %s225_s25 }
  0x1d   :  { %243 = vmatpush3.msra.mxu1 %v53_v3  ;;  %100 = vmatpush1.msra.mxu0 %v51_v2  ;;  %v45_v9 = vld [vmem:[#allocation5 + $0x18] sm:$0xff]  ;;  %v43_v10 = vld [vmem:[#allocation5 + $0x8] sm:$0xff]  ;;  %v44_v11 = vld [vmem:[#allocation5 + $0x10] sm:$0xff]  ;;  %s300_s26 = scalar_lea.vmem %s226_s25, 384  ;;  %p305_p11 = scmp.lt.s32.totalorder %s226_s25, %s226_s25 }
  0x1e   :  { %244 = vmatprep.subr.mxu1 %v330_v0  ;;  %101 = vmatprep.subr.mxu0 %v49_v4  ;;  %v42_v12 = vld [vmem:[#allocation5] sm:$0xff]  ;;  %v41_v13 = vld [vmem:[#allocation2] sm:$0xff]  ;;  %v66_v16 = vsub.s32 2, %v57_v15  ;;  %v58_v17 = vsub.s32 0, %v57_v15  ;;  %v62_v19 = vsub.s32 1, %v57_v15  ;;  %p301_p10 = scmp.ne.s32.totalorder %s226_s25, %s300_s26  ;;  %p306_p12 = scmp.lt.s32.totalorder %s300_s26, %s300_s26 }
  0x1f   :  { %245 = vmatpush3.msra.mxu1 %v50_v6  ;;  %102 = vmatpush1.msra.mxu0 %v48_v5  ;;  %v54_v18 = vld [vmem:[%s367_s2] sm:$0x7] }
  0x20   :  { %246 = vmatprep.subr.mxu1 %v330_v0  ;;  %103 = vmatprep.subr.mxu0 %v46_v7  ;;  %v67_v20 = vrot.slane %v54_v18, %v66_v16  ;;  %v59_v21 = vrot.slane %v54_v18, %v58_v17  ;;  %v63_v23 = vrot.slane %v54_v18, %v62_v19  ;;  %p307_p13 = por %p306_p12, %p305_p11 }
  0x21   :  { %247 = vmatpush3.msra.mxu1 %v47_v8  ;;  %104 = vmatpush1.msra.mxu0 %v45_v9 }
  0x22   :  { %248 = vmatprep.subr.mxu1 %v330_v0  ;;  %105 = vmatprep.subr.mxu0 %v43_v10  ;;  %p308_p0 = pnand %p307_p13, %p301_p10 }
  0x23   :  { %249 = vmatpush3.msra.mxu1 %v44_v11  ;;  %106 = vmatpush1.msra.mxu0 %v42_v12 }
  0x24   :  { %251 = vmatmul.mubr.msk.f32.vlgmr.msra.gmra.mxu1 %vm71_vm1, %v41_v13  ;;  %235 = vmatmul.mubr.msk.f32.vlgmr.msra.gmra.mxu0 %vm71_vm1, %v41_v13 }
  0xe4   :  { %v212_v22 = vpop.f32.mrf.mxu1  ;;  %v141_v24 = vpop.f32.mrf.mxu0 }
  0xe5   :  { %v213_v25 = vadd.f32 %v212_v22, %v67_v20  ;;  %v142_v26 = vadd.f32 %v141_v24, %v59_v21 }
  0xe6   :  { %v252_v27 = vpop.f32.mrf.mxu1  ;;  %v143_v28 = vpop.f32.mrf.mxu0 }
  0xe7   :  { %218 = vst [vmem:[#allocation7 + $0x10] sm:$0xff] %v213_v25  ;;  %216 = vst [vmem:[#allocation7] sm:$0xff] %v142_v26  ;;  %v144_v29 = vadd.f32 %v143_v28, %v63_v23 }
  0xe9   :  { %217 = vst [vmem:[#allocation7 + $0x8] sm:$0xff] %v144_v29 }
  0xea   :  { %311 = shalt.err (!%p308_p0)
}
  0xeb   :  { %228 = dma.vmem_to_hbm [thread:$0]  %s226_s25, 384, %s368_s3, [#allocation4]  }
  0xec   :  { %324 = dma.done.wait [#allocation4], 384  }
  0xed   :  { %325 = vsyncadd [#allocation4], 4294966912 }
  0xee   :  { %232 = vsyncpa [#allocation3], 1 }
  0xef   :  { %233 = vsyncpa [#allocation6], 1 }
  0xf0   :  { %234 = vsyncpa [#allocation4], 1 }

</bundles_post_ra>
